<compile_context>
chip_gen: v6e
topology: v6e:2x2x1
jax: 0.10.0
libtpu: 0.0.40
codegen_flags: <defaults>
</compile_context>

<pallas_src>
import functools

import jax
import jax.numpy as jnp
from jax.experimental import pallas as pl
from jax.experimental.pallas import tpu as pltpu

N_CLASSES = 3     # real classes
CLS_PAD = 8       # classes padded to one sublane group (out sublane dim)
LANE = 128        # TPU vreg lane width; batch dim is 128-aligned (lane axis)
NEG_BIG = -1e30   # padded class logits -> exp() == 0, softmax unaffected


def _round_up(n: int, m: int) -> int:
    return ((n + m - 1) // m) * m


def fused_affine_softmax_kernel(x_ref, w_ref, b_ref, o_ref):
    """One batch tile. Batch on lanes, classes on sublanes.

    logits[c, n] = sum_k w[c, k] * x[k, n] + b[c]; softmax over c (<=8 sublanes).
    """
    xt = x_ref[...]            # (F_IN, TB)   batch on lanes
    w = w_ref[...]             # (CLS_PAD, F_IN)
    f_in = w.shape[1]

    # K=4 affine map as broadcast-multiply-adds on the VPU: the MXU would be
    # badly underfilled at K=4 and adds a result-FIFO round trip per tile.
    logits = b_ref[...] + w[:, 0:1] * xt[0:1, :]          # (CLS_PAD, TB)
    for k in range(1, f_in):
        logits = logits + w[:, k:k + 1] * xt[k:k + 1, :]

    # Softmax over the class sublanes. Padded classes carry bias = -1e30 so
    # exp() underflows to exactly 0 and the max/sum are unaffected.
    m = jnp.max(logits, axis=0, keepdims=True)            # (1, TB)  XLU reduce
    e = jnp.exp(logits - m)                                # (CLS_PAD, TB) EUP
    s = jnp.sum(e, axis=0, keepdims=True)                  # (1, TB)
    r = pl.reciprocal(s, approx=True)                      # EUP slot (free-ish)
    r = r * (2.0 - s * r)                                  # one Newton step
    o_ref[...] = (e * r).astype(o_ref.dtype)


def fold_params(params):
    """Collapse fc1/fc2/fc3 into one affine map (exact up to fp re-association:
    there is no nonlinearity between the Linear layers) and lay it out for the
    kernel: classes on sublanes padded 3 -> 8, padded biases = -1e30.
    Call once outside the hot loop (params are static)."""
    w1, b1, w2, b2, w3, b3 = params
    w_eff = w1 @ w2 @ w3                        # (4, 3)
    b_eff = b1 @ w2 @ w3 + b2 @ w3 + b3         # (1, 3)
    f_in, n_out = w_eff.shape
    assert n_out <= CLS_PAD
    w_fold = jnp.zeros((CLS_PAD, f_in), jnp.float32).at[:n_out, :].set(w_eff.T)
    b_fold = jnp.full((CLS_PAD, 1), NEG_BIG, jnp.float32).at[:n_out, 0].set(b_eff[0])
    return w_fold, b_fold


@functools.partial(jax.jit, static_argnames=("block_b",))
def simple_network_forward(x, w_fold, b_fold, *, block_b=4096):
    """softmax(fc_3(fc_2(fc_1(x))), dim=1) with folded params (see fold_params)."""
    b, f_in = x.shape
    assert w_fold.shape == (CLS_PAD, f_in)

    # --- batch tiling: batch sits on lanes, so tiles must be 128-aligned -----
    block_b = max(LANE, _round_up(block_b, LANE))
    b128 = _round_up(b, LANE)                      # lane-align the batch
    tb = min(block_b, b128)
    grid = pl.cdiv(b128, tb)
    tb = _round_up(pl.cdiv(b128, grid), LANE)      # rebalance: pad waste < 128 rows
    b_padded = grid * tb

    # Pad + transpose x -> (F_IN, B_pad); padded columns are zeros, their
    # (garbage-free) softmax output is sliced away below.
    if b_padded == b:
        x_t = x.T.astype(jnp.float32)
    else:
        x_t = jnp.zeros((f_in, b_padded), jnp.float32).at[:, :b].set(
            x.T.astype(jnp.float32))

    cost = pl.CostEstimate(
        flops=b_padded * (2 * CLS_PAD * f_in + 6 * CLS_PAD),
        transcendentals=b_padded * (CLS_PAD + 1),
        bytes_accessed=4 * (f_in * b_padded            # x.T read
                            + CLS_PAD * b_padded       # out write
                            + CLS_PAD * (f_in + 1)),   # folded W / b
    )

    out_t = pl.pallas_call(
        fused_affine_softmax_kernel,
        out_shape=jax.ShapeDtypeStruct((CLS_PAD, b_padded), jnp.float32),
        grid_spec=pltpu.PrefetchScalarGridSpec(
            num_scalar_prefetch=0,
            grid=(grid,),
            in_specs=[
                pl.BlockSpec((f_in, tb), lambda i: (0, i)),       # streamed x.T tiles
                pl.BlockSpec((CLS_PAD, f_in), lambda i: (0, 0)),  # resident folded W
                pl.BlockSpec((CLS_PAD, 1), lambda i: (0, 0)),     # resident folded b
            ],
            out_specs=pl.BlockSpec((CLS_PAD, tb), lambda i: (0, i)),
        ),
        compiler_params=pltpu.CompilerParams(
            # Batch tiles are independent -> sharded across both TCs on v7x;
            # measured no-op on single-TC v5e/v6e.
            dimension_semantics=(pltpu.PARALLEL,),
        ),
        cost_estimate=cost,
    )(x_t, w_fold, b_fold)

    return out_t[:N_CLASSES, :b].T                    # (B, 3)


def init_params(key):
    """PyTorch-default-like Linear init U(-1/sqrt(fan_in), 1/sqrt(fan_in)).
    Weights stored as (in, out), i.e. pre-transposed vs torch Linear.weight."""
    dims = [(4, 100), (100, 100), (100, 3)]
    params = []
    for fan_in, fan_out in dims:
        key, kw, kb = jax.random.split(key, 3)
        bound = 1.0 / jnp.sqrt(fan_in)
        w = jax.random.uniform(kw, (fan_in, fan_out), jnp.float32, -bound, bound)
        b = jax.random.uniform(kb, (1, fan_out), jnp.float32, -bound, bound)
        params += [w, b]
    return params


def reference_forward(x, params):
    """Layer-by-layer plain-JAX reference matching the PyTorch module."""
    w1, b1, w2, b2, w3, b3 = params
    h = x @ w1 + b1
    h = h @ w2 + b2
    logits = h @ w3 + b3
    return jax.nn.softmax(logits, axis=1)


if __name__ == "__main__":
    key = jax.random.PRNGKey(0)
    key, kx = jax.random.split(key)
    params = init_params(key)
    w_fold, b_fold = fold_params(params)   # folded once, outside the hot path

    # Primary small case (Iris-like): batch 8, 4 features -> 3 classes.
    B = 8
    x = jax.random.normal(kx, (B, 4), dtype=jnp.float32)
    out = jax.block_until_ready(simple_network_forward(x, w_fold, b_fold))
    assert out.shape == (B, N_CLASSES), out.shape
    assert jnp.allclose(jnp.sum(out, axis=1), 1.0, atol=1e-4)
    ref = reference_forward(x, params)
    # tolerance absorbs W_eff collapse (fp re-association) + approx-recip path
    assert jnp.allclose(out, ref, atol=1e-4, rtol=1e-4), float(jnp.max(jnp.abs(out - ref)))

    # Ragged batch + multi-tile grid (B=300, tile 128 -> 3 tiles) to exercise
    # the pipelined / padded path.
    key, kx2 = jax.random.split(key)
    B2 = 300
    x2 = jax.random.normal(kx2, (B2, 4), dtype=jnp.float32)
    out2 = jax.block_until_ready(
        simple_network_forward(x2, w_fold, b_fold, block_b=128))
    ref2 = reference_forward(x2, params)
    assert out2.shape == (B2, N_CLASSES), out2.shape
    assert jnp.allclose(jnp.sum(out2, axis=1), 1.0, atol=1e-4)
    assert jnp.allclose(out2, ref2, atol=1e-4, rtol=1e-4)

    print("KERNEL_OK")
</pallas_src>

<mosaic_0001>
module attributes {stable_mosaic.version = 11 : i64} {
  func.func @fused_affine_softmax_kernel(%arg0: i32, %arg1: memref<4x128xf32, #tpu.memory_space<vmem>>, %arg2: memref<8x4xf32, #tpu.memory_space<vmem>>, %arg3: memref<8x1xf32, #tpu.memory_space<vmem>>, %arg4: memref<8x128xf32, #tpu.memory_space<vmem>>) attributes {dimension_semantics = [#tpu.dimension_semantics<parallel>], iteration_bounds = array<i64: 1>, scalar_prefetch = 0 : i64, scratch_operands = 0 : i64, tpu.core_type = #tpu.core_type<tc>, window_params = [{transform_indices = @transform_0, window_bounds = array<i64: 4, 128>}, {pipeline_mode = #tpu.pipeline_mode<synchronous>, transform_indices = @transform_1, window_bounds = array<i64: 8, 4>}, {pipeline_mode = #tpu.pipeline_mode<synchronous>, transform_indices = @transform_2, window_bounds = array<i64: 8, 1>}, {transform_indices = @transform_3, window_bounds = array<i64: 8, 128>}]} {
    %c0 = arith.constant 0 : index
    %c0_0 = arith.constant 0 : index
    %0 = vector.load %arg1[%c0, %c0_0] : memref<4x128xf32, #tpu.memory_space<vmem>>, vector<4x128xf32>
    %c0_1 = arith.constant 0 : index
    %c0_2 = arith.constant 0 : index
    %1 = vector.load %arg2[%c0_1, %c0_2] : memref<8x4xf32, #tpu.memory_space<vmem>>, vector<8x4xf32>
    %c0_3 = arith.constant 0 : index
    %c0_4 = arith.constant 0 : index
    %2 = vector.load %arg3[%c0_3, %c0_4] : memref<8x1xf32, #tpu.memory_space<vmem>>, vector<8x1xf32>
    %3 = vector.extract_strided_slice %1 {offsets = [0, 0], sizes = [8, 1], strides = [1, 1]} : vector<8x4xf32> to vector<8x1xf32>
    %4 = vector.extract_strided_slice %0 {offsets = [0, 0], sizes = [1, 128], strides = [1, 1]} : vector<4x128xf32> to vector<1x128xf32>
    %5 = vector.broadcast %3 : vector<8x1xf32> to vector<8x128xf32>
    %6 = vector.broadcast %4 : vector<1x128xf32> to vector<8x128xf32>
    %7 = arith.mulf %5, %6 : vector<8x128xf32>
    %8 = vector.broadcast %2 : vector<8x1xf32> to vector<8x128xf32>
    %9 = arith.addf %8, %7 : vector<8x128xf32>
    %10 = vector.extract_strided_slice %1 {offsets = [0, 1], sizes = [8, 1], strides = [1, 1]} : vector<8x4xf32> to vector<8x1xf32>
    %11 = vector.extract_strided_slice %0 {offsets = [1, 0], sizes = [1, 128], strides = [1, 1]} : vector<4x128xf32> to vector<1x128xf32>
    %12 = vector.broadcast %10 : vector<8x1xf32> to vector<8x128xf32>
    %13 = vector.broadcast %11 : vector<1x128xf32> to vector<8x128xf32>
    %14 = arith.mulf %12, %13 : vector<8x128xf32>
    %15 = arith.addf %9, %14 : vector<8x128xf32>
    %16 = vector.extract_strided_slice %1 {offsets = [0, 2], sizes = [8, 1], strides = [1, 1]} : vector<8x4xf32> to vector<8x1xf32>
    %17 = vector.extract_strided_slice %0 {offsets = [2, 0], sizes = [1, 128], strides = [1, 1]} : vector<4x128xf32> to vector<1x128xf32>
    %18 = vector.broadcast %16 : vector<8x1xf32> to vector<8x128xf32>
    %19 = vector.broadcast %17 : vector<1x128xf32> to vector<8x128xf32>
    %20 = arith.mulf %18, %19 : vector<8x128xf32>
    %21 = arith.addf %15, %20 : vector<8x128xf32>
    %22 = vector.extract_strided_slice %1 {offsets = [0, 3], sizes = [8, 1], strides = [1, 1]} : vector<8x4xf32> to vector<8x1xf32>
    %23 = vector.extract_strided_slice %0 {offsets = [3, 0], sizes = [1, 128], strides = [1, 1]} : vector<4x128xf32> to vector<1x128xf32>
    %24 = vector.broadcast %22 : vector<8x1xf32> to vector<8x128xf32>
    %25 = vector.broadcast %23 : vector<1x128xf32> to vector<8x128xf32>
    %26 = arith.mulf %24, %25 : vector<8x128xf32>
    %27 = arith.addf %21, %26 : vector<8x128xf32>
    %cst = arith.constant dense<0xFF800000> : vector<128xf32>
    %28 = vector.multi_reduction <maximumf>, %27, %cst [0] : vector<8x128xf32> to vector<128xf32>
    %29 = vector.shape_cast %28 : vector<128xf32> to vector<1x128xf32>
    %30 = vector.broadcast %29 : vector<1x128xf32> to vector<8x128xf32>
    %31 = arith.subf %27, %30 : vector<8x128xf32>
    %32 = math.exp %31 : vector<8x128xf32>
    %cst_5 = arith.constant dense<0.000000e+00> : vector<128xf32>
    %33 = vector.multi_reduction <add>, %32, %cst_5 [0] : vector<8x128xf32> to vector<128xf32>
    %34 = vector.shape_cast %33 : vector<128xf32> to vector<1x128xf32>
    %35 = tpu.reciprocal %34 {approx = true} : vector<1x128xf32> -> vector<1x128xf32>
    %36 = arith.mulf %34, %35 : vector<1x128xf32>
    %cst_6 = arith.constant 2.000000e+00 : f32
    %37 = vector.broadcast %cst_6 : f32 to vector<1x128xf32>
    %38 = arith.subf %37, %36 : vector<1x128xf32>
    %39 = arith.mulf %35, %38 : vector<1x128xf32>
    %40 = vector.broadcast %39 : vector<1x128xf32> to vector<8x128xf32>
    %41 = arith.mulf %32, %40 : vector<8x128xf32>
    %c0_7 = arith.constant 0 : index
    %c0_8 = arith.constant 0 : index
    %42 = vector.load %arg4[%c0_7, %c0_8] : memref<8x128xf32, #tpu.memory_space<vmem>>, vector<8x128xf32>
    tpu.vector_store %arg4[%c0_7, %c0_8], %41 {strides = array<i32>} : memref<8x128xf32, #tpu.memory_space<vmem>>, vector<8x128xf32>,
    return
  }
  func.func @transform_0(%arg0: i32) -> (i32, i32) {
    %c0_i32 = arith.constant 0 : i32
    %c0_i32_0 = arith.constant 0 : i32
    return %c0_i32, %arg0 : i32, i32
  }
  func.func @transform_1(%arg0: i32) -> (i32, i32) {
    %c0_i32 = arith.constant 0 : i32
    %c0_i32_0 = arith.constant 0 : i32
    %c0_i32_1 = arith.constant 0 : i32
    return %c0_i32, %c0_i32_0 : i32, i32
  }
  func.func @transform_2(%arg0: i32) -> (i32, i32) {
    %c0_i32 = arith.constant 0 : i32
    %c0_i32_0 = arith.constant 0 : i32
    %c0_i32_1 = arith.constant 0 : i32
    return %c0_i32, %c0_i32_0 : i32, i32
  }
  func.func @transform_3(%arg0: i32) -> (i32, i32) {
    %c0_i32 = arith.constant 0 : i32
    %c0_i32_0 = arith.constant 0 : i32
    return %c0_i32, %arg0 : i32, i32
  }
}

</mosaic_0001>

<bundles_post_ra>
// kernel: simple_network_forward.1
= control target key start
LH: loop header
LB: loop body
LE: loop exit
PB: predicated region body
PF: predicated region fallthrough
CT: control target
= control target key end

     0   :  { %v100_v0 = vmov 0   ;;  %v101_v1 = vmov 1   ;;  %v102_v4 = vmov 2   ;;  %v103_v5 = vmov 3   ;;  %s136_s1 = inlined_call_operand.vmem [shape: f32[8,4], index: 1, kind: input, shape index: {}]   ;;  %s137_s2 = inlined_call_operand.vmem [shape: f32[8,1], index: 2, kind: input, shape index: {}]   ;;  %s138_s0 = inlined_call_operand.vmem [shape: f32[4,128], index: 0, kind: input, shape index: {}]   ;;  %s139_s3 = inlined_call_operand.vmem [shape: f32[8,128], index: 3, kind: output, shape index: {}]  }
   0x1   :  { %92 = vset.pattern.permute.xlu0 %v100_v0  ;;  %93 = vset.pattern.permute.xlu1 %v101_v1  ;;  %v15_v2 = vld [vmem:[%s136_s1] sm:$0xff]  ;;  %v22_v6 = vlaneseq }
   0x2   :  { %19 = vperm.xlu0 %92, %v15_v2   ;;  %34 = vperm.xlu1 %93, %v15_v2   ;;  %v16_v3 = vld [vmem:[%s137_s2] sm:$0xff] }
   0x3   :  { %v23_v7 = vshrl.u32 %v22_v6, 7  ;;  %v14_v9 = vld [vmem:[%s138_s0] sm:$0xf] }
   0x5   :  { %v24_v8 = vsub.s32 0, %v23_v7  ;;  %v39_v10 = vsub.s32 1, %v23_v7  ;;  %v49_v11 = vsub.s32 2, %v23_v7  ;;  %v59_v17 = vsub.s32 3, %v23_v7 }
   0x6   :  { %29 = vperm.xlu0 %92, %v16_v3   ;;  %94 = vset.pattern.permute.xlu1 %v102_v4 }
   0x7   :  { %44 = vperm.xlu1 %94, %v15_v2   ;;  %v25_v12 = vrot.slane %v14_v9, %v24_v8  ;;  %v40_v15 = vrot.slane %v14_v9, %v39_v10  ;;  %v50_v16 = vrot.slane %v14_v9, %v49_v11  ;;  %v60_v24 = vrot.slane %v14_v9, %v59_v17 }
   0xa   :  { %95 = vset.pattern.permute.xlu0 %v103_v5 }
   0xb   :  { %54 = vperm.xlu0 %95, %v15_v2  }
  0x7d   :  { %v20_v13 = vpop.permute.xlu0 %19  ;;  %v35_v14 = vpop.permute.xlu1 %34 }
  0x7e   :  { %v26_v18 = vmul.f32 %v25_v12, %v20_v13  ;;  %v41_v20 = vmul.f32 %v40_v15, %v35_v14 }
  0x81   :  { %v30_v19 = vpop.permute.xlu0 %29 }
  0x82   :  { %v32_v21 = vadd.f32 %v30_v19, %v26_v18  ;;  %v45_v22 = vpop.permute.xlu1 %44 }
  0x83   :  { %v51_v23 = vmul.f32 %v50_v16, %v45_v22 }
  0x84   :  { %v42_v25 = vadd.f32 %v41_v20, %v32_v21 }
  0x86   :  { %v52_v26 = vadd.f32 %v51_v23, %v42_v25  ;;  %v55_v27 = vpop.permute.xlu0 %54 }
  0x87   :  { %v61_v28 = vmul.f32 %v60_v24, %v55_v27 }
  0x89   :  { %v62_v29 = vadd.f32 %v61_v28, %v52_v26 }
  0x8b   :  { %v63_v30 = vrot.slane %v62_v29, 4 }
  0x8d   :  { %v64_v31 = vmax.f32 %v62_v29, %v63_v30 }
  0x8f   :  { %v65_v32 = vrot.slane %v64_v31, 2 }
  0x91   :  { %v66_v33 = vmax.f32 %v64_v31, %v65_v32 }
  0x93   :  { %v67_v34 = vrot.slane %v66_v33, 1 }
  0x95   :  { %v68_v35 = vmax.f32 %v66_v33, %v67_v34 }
  0x97   :  { %v69_v36 = vsub.f32 %v62_v29, %v68_v35 }
  0x99   :  { %v70_v37 = vmul.f32 1.442695, %v69_v36 }
  0x9b   :  { %96 = vpow2.f32 %v70_v37 }
  0xa8   :  { %v97_v38 = vpop.eup %96 }
  0xa9   :  { %v72_v39 = vrot.slane %v97_v38, 4 }
  0xab   :  { %v73_v40 = vadd.f32 %v97_v38, %v72_v39 }
  0xad   :  { %v74_v41 = vrot.slane %v73_v40, 2 }
  0xaf   :  { %v75_v42 = vadd.f32 %v74_v41, %v73_v40 }
  0xb1   :  { %v76_v43 = vrot.slane %v75_v42, 1 }
  0xb3   :  { %v77_v44 = vadd.f32 %v76_v43, %v75_v42 }
  0xb5   :  { %98 = vrcp.f32 %v77_v44 }
  0xc2   :  { %v99_v45 = vpop.eup %98 }
  0xc3   :  { %v79_v46 = vmul.f32 %v99_v45, %v77_v44 }
  0xc5   :  { %v80_v47 = vsub.f32 2.0, %v79_v46 }
  0xc7   :  { %v81_v48 = vmul.f32 %v99_v45, %v80_v47 }
  0xc9   :  { %v82_v49 = vmul.f32 %v97_v38, %v81_v48 }
  0xcb   :  { %83 = vst [vmem:[%s139_s3] sm:$0xff] %v82_v49 }

</bundles_post_ra>
